<compile_context>
chip_gen: v6e
topology: v6e:2x2x1
jax: 0.10.0
libtpu: 0.0.40
codegen_flags: <defaults>
</compile_context>

<pallas_src>
import functools

import jax
import jax.numpy as jnp
from jax.experimental import pallas as pl
from jax.experimental.pallas import tpu as pltpu


def _round_up(x, m):
    return ((x + m - 1) // m) * m


def _vmem_capacity_bytes():
    """Physical VMEM per TensorCore (64 MiB on v7x, 128 MiB on v5e/v6e)."""
    try:
        return int(pltpu.get_tpu_info().vmem_capacity_bytes)
    except Exception:
        return 64 * 1024 * 1024  # conservative fallback (v7x-sized)


def _nas_adapter_kernel(idx_ref, coef_ref, x_ref, a_ref, b_ref, o_ref,
                        *, residual):
    """Fused LoRA (down @ up) + GDAS hard-weight mixing + optional residual.

    idx_ref  : SMEM (1,) i32 scalar-prefetch: sampled op (0='none', 1='lora')
    coef_ref : SMEM (2,) f32: [lora_coef, const_add]
    x_ref    : VMEM (tm, H)     input rows
    a_ref    : VMEM (H, r_pad)  LoRA down-projection (rank padded to 128)
    b_ref    : VMEM (r_pad, H)  LoRA up-projection
    o_ref    : VMEM (tm, H)
    """
    const_add = coef_ref[1]

    @pl.when(idx_ref[0] == 1)
    def _():
        lora_coef = coef_ref[0]
        x = x_ref[...]
        # hot path: two MXU matmuls in native dtype, f32 accumulation
        h = jnp.dot(x, a_ref[...], preferred_element_type=jnp.float32)
        y = jnp.dot(h.astype(b_ref.dtype), b_ref[...],
                    preferred_element_type=jnp.float32)
        out = (lora_coef * y + const_add).astype(o_ref.dtype)
        if residual:
            out = out + x  # residual add in the input dtype (no f32 temp)
        o_ref[...] = out

    @pl.when(idx_ref[0] != 1)
    def _():
        # 'none' op selected: no matmul — copy + scalar add at HBM bandwidth
        c = const_add.astype(o_ref.dtype)
        if residual:
            o_ref[...] = x_ref[...] + c
        else:
            o_ref[...] = jnp.zeros(o_ref.shape, o_ref.dtype) + c


@functools.partial(jax.jit, static_argnames=("tm", "residual"))
def nas_adapter_cell(x, lora_a, lora_b, coefs, op_index, *, tm=512,
                     residual=True):
    """x: (B,S,H); lora_a: (H,r); lora_b: (r,H);
    coefs: (2,) f32 [lora_coef, const_add]; op_index: (1,) i32."""
    B, S, H = x.shape
    r = lora_a.shape[1]
    N = B * S

    # Lane-dense LoRA rank (prefer prepare_lora_weights(); this is a no-op
    # when the params were already padded there). Zeros don't change results.
    r_pad = _round_up(max(r, 128), 128)
    if r_pad != r:
        lora_a = jnp.pad(lora_a, ((0, 0), (0, r_pad - r)))
        lora_b = jnp.pad(lora_b, ((0, r_pad - r), (0, 0)))

    xf = x.reshape(N, H)  # free reshape (contiguous row-major)

    x_bytes = jnp.dtype(x.dtype).itemsize
    w_bytes = jnp.dtype(lora_a.dtype).itemsize
    vmem_cap = _vmem_capacity_bytes()

    def footprint(t):
        io = 2 * 2 * t * H * x_bytes            # x + out tiles, double-buffered
        w = 2 * 2 * H * r_pad * w_bytes         # A + B blocks (double-buffered)
        f32_tmp = t * r_pad * 4 + 2 * t * H * 4  # f32 h + (tm,H) y + slack
        return io + w + f32_tmp

    # Row tile: start big (HBM roofline), shrink to ~60% of chip VMEM, and
    # keep >= 4 grid steps for large N (v7x 2-TC megacore + DMA overlap).
    # NOTE: the last block dim is the full H, so any H compiles; H % 128 == 0
    # is the lane-dense fast path for the output stores (real transformer H
    # is fine — the H=32 smoke test below exercises the masked-store path).
    tm_eff = _round_up(min(tm, N), 8)
    budget = int(0.6 * vmem_cap)
    while tm_eff > 64 and footprint(tm_eff) > budget:
        tm_eff = max(64, _round_up(tm_eff // 2, 8))
    if N >= 1024 and -(-N // tm_eff) < 4:
        tm_eff = min(tm_eff, _round_up(-(-N // 4), 8))

    # Partial last block: Pallas masks the out-of-range output rows; the
    # corresponding garbage input rows are never reduced across rows, so they
    # are harmless. Do NOT add a row-wise reduction here without revisiting.
    grid = (-(-N // tm_eff),)

    vmem_limit = int(min(0.8 * vmem_cap,
                         max(2 * footprint(tm_eff), 32 * 1024 * 1024)))

    out = pl.pallas_call(
        functools.partial(_nas_adapter_kernel, residual=residual),
        out_shape=jax.ShapeDtypeStruct((N, H), x.dtype),
        grid_spec=pltpu.PrefetchScalarGridSpec(
            num_scalar_prefetch=1,
            grid=grid,
            in_specs=[
                pl.BlockSpec(memory_space=pltpu.SMEM),             # coefs (2,)
                pl.BlockSpec((tm_eff, H), lambda i, idx: (i, 0)),  # x rows
                pl.BlockSpec((H, r_pad), lambda i, idx: (0, 0)),   # LoRA A
                pl.BlockSpec((r_pad, H), lambda i, idx: (0, 0)),   # LoRA B
            ],
            out_specs=pl.BlockSpec((tm_eff, H), lambda i, idx: (i, 0)),
        ),
        compiler_params=pltpu.CompilerParams(
            dimension_semantics=("parallel",),
            vmem_limit_bytes=vmem_limit,
        ),
    )(op_index, coefs, xf, lora_a, lora_b)

    return out.reshape(B, S, H)


def prepare_lora_weights(lora_a, lora_b):
    """One-time parameter prep: zero-pad the LoRA rank to a lane-dense 128 so
    the per-forward path carries no pad ops (zeros do not change the math)."""
    r = lora_a.shape[1]
    r_pad = _round_up(max(r, 128), 128)
    if r_pad != r:
        lora_a = jnp.pad(lora_a, ((0, 0), (0, r_pad - r)))
        lora_b = jnp.pad(lora_b, ((0, r_pad - r), (0, 0)))
    return lora_a, lora_b


def gdas_gumbel_prob(arch_parameters, key, tau=0.5):
    """GDAS straight-through gumbel softmax over the op axis (axis=1)."""
    gumbels = -jnp.log(jax.random.exponential(key, arch_parameters.shape))
    logits = (jax.nn.log_softmax(arch_parameters, axis=1) + gumbels) / tau
    probs = jax.nn.softmax(logits, axis=1)
    index = jnp.argmax(probs, axis=-1)                       # (num_edges,)
    one_h = jax.nn.one_hot(index, arch_parameters.shape[1], dtype=probs.dtype)
    hardwts = one_h - jax.lax.stop_gradient(probs) + probs   # value == one-hot
    return hardwts, index


def nas_adapter_forward(x, params, key, residual=True):
    """Full NASAdapter.forward (max_nodes=2 -> single edge '1<-0')."""
    hardwts, index = gdas_gumbel_prob(params["arch_parameters"], key)
    hw, idx = hardwts[0], index[0]
    # edge mixing: idx==1 -> hw[0] + hw[1]*lora(x); idx==0 -> hw[1] (scalar)
    lora_coef = jnp.where(idx == 1, hw[1], 0.0)
    const_add = jnp.where(idx == 1, hw[0], hw[1])
    coefs = jnp.stack([lora_coef, const_add]).astype(jnp.float32)
    op_index = index.astype(jnp.int32)                       # shape (1,)
    return nas_adapter_cell(x, params["lora_a"], params["lora_b"],
                            coefs, op_index, residual=residual)


def reference_forward(x, params, key, residual=True):
    """Pure-JAX reference of the same forward (for sanity check)."""
    hardwts, index = gdas_gumbel_prob(params["arch_parameters"], key)
    hw, idx = hardwts[0], index[0]
    lora = (x @ params["lora_a"]) @ params["lora_b"]
    cell = jnp.where(idx == 1, hw[0] + hw[1] * lora,
                     hw[0] * jnp.zeros_like(x) + hw[1])
    return cell + x if residual else cell


def cell_reference(x, lora_a, lora_b, coefs, idx, residual=True):
    """Pure-JAX reference for a forced op selection (same coef convention)."""
    lora = (x @ lora_a) @ lora_b
    cell = jnp.where(idx == 1, coefs[1] + coefs[0] * lora,
                     jnp.zeros_like(x) + coefs[1])
    return cell + x if residual else cell


if __name__ == "__main__":
    # small transformer-ish shapes: batch=2, seq=8, hidden=32, lora rank=8
    B, S, H, R = 2, 8, 32, 8
    NUM_EDGES, NUM_OPS = 1, 2            # max_node=2, ops=('none','lora')

    key = jax.random.PRNGKey(0)
    k_arch, k_a, k_b, k_x, k_gumbel = jax.random.split(key, 5)

    params = {
        "arch_parameters": 0.001 * jax.random.normal(
            k_arch, (NUM_EDGES, NUM_OPS), dtype=jnp.float32),
        "lora_a": jax.random.normal(k_a, (H, R), dtype=jnp.float32)
                  * (1.0 / jnp.sqrt(H)),
        "lora_b": 0.01 * jax.random.normal(k_b, (R, H), dtype=jnp.float32),
    }
    # one-time parameter prep (rank padded to lane-dense 128)
    params["lora_a"], params["lora_b"] = prepare_lora_weights(
        params["lora_a"], params["lora_b"])
    x = jax.random.normal(k_x, (B, S, H), dtype=jnp.float32)

    out = jax.block_until_ready(
        nas_adapter_forward(x, params, k_gumbel, residual=True))
    ref = reference_forward(x, params, k_gumbel, residual=True)
    assert out.shape == (B, S, H)
    assert jnp.allclose(out, ref, atol=1e-5, rtol=1e-5)

    # non-divisible row count (N = 3*37 = 111), H=128; force both branches
    B2, S2, H2 = 3, 37, 128
    x2 = jax.random.normal(k_x, (B2, S2, H2), dtype=jnp.float32)
    a2, b2 = prepare_lora_weights(
        jax.random.normal(k_a, (H2, R), dtype=jnp.float32)
        * (1.0 / jnp.sqrt(H2)),
        0.01 * jax.random.normal(k_b, (R, H2), dtype=jnp.float32))
    for idx_val, coefs in ((1, jnp.array([0.7, 0.3], jnp.float32)),   # 'lora'
                           (0, jnp.array([0.0, 0.3], jnp.float32))):  # 'none'
        op_index = jnp.array([idx_val], jnp.int32)
        got = jax.block_until_ready(
            nas_adapter_cell(x2, a2, b2, coefs, op_index, residual=True))
        want = cell_reference(x2, a2, b2, coefs, idx_val, residual=True)
        assert got.shape == (B2, S2, H2)
        assert jnp.allclose(got, want, atol=1e-4, rtol=1e-4)

    print("KERNEL_OK")
</pallas_src>

<mosaic_0001>
module attributes {stable_mosaic.version = 11 : i64} {
  func.func @_nas_adapter_kernel(%arg0: i32, %arg1: memref<1xi32, #tpu.memory_space<smem>>, %arg2: memref<2xf32, #tpu.memory_space<smem>>, %arg3: memref<16x32xf32, #tpu.memory_space<vmem>>, %arg4: memref<32x128xf32, #tpu.memory_space<vmem>>, %arg5: memref<128x32xf32, #tpu.memory_space<vmem>>, %arg6: memref<16x32xf32, #tpu.memory_space<vmem>>) attributes {dimension_semantics = [#tpu.dimension_semantics<parallel>], iteration_bounds = array<i64: 1>, scalar_prefetch = 1 : i64, scratch_operands = 0 : i64, tpu.core_type = #tpu.core_type<tc>, window_params = [{transform_indices = @transform_0, window_bounds = array<i64: 2>}, {transform_indices = @transform_1, window_bounds = array<i64: 16, 32>}, {pipeline_mode = #tpu.pipeline_mode<synchronous>, transform_indices = @transform_2, window_bounds = array<i64: 32, 128>}, {pipeline_mode = #tpu.pipeline_mode<synchronous>, transform_indices = @transform_3, window_bounds = array<i64: 128, 32>}, {transform_indices = @transform_4, window_bounds = array<i64: 16, 32>}]} {
    %c1 = arith.constant 1 : index
    %0 = memref.load %arg2[%c1] : memref<2xf32, #tpu.memory_space<smem>>
    %c0 = arith.constant 0 : index
    %1 = memref.load %arg1[%c0] : memref<1xi32, #tpu.memory_space<smem>>
    %c1_i32 = arith.constant 1 : i32
    %2 = arith.cmpi eq, %1, %c1_i32 : i32
    %3 = arith.extui %2 : i1 to i32
    %c0_i32 = arith.constant 0 : i32
    %4 = arith.cmpi ne, %3, %c0_i32 : i32
    scf.if %4 {
      %c0_3 = arith.constant 0 : index
      %9 = memref.load %arg2[%c0_3] : memref<2xf32, #tpu.memory_space<smem>>
      %c0_4 = arith.constant 0 : index
      %c0_5 = arith.constant 0 : index
      %10 = vector.load %arg3[%c0_4, %c0_5] : memref<16x32xf32, #tpu.memory_space<vmem>>, vector<16x32xf32>
      %c0_6 = arith.constant 0 : index
      %c0_7 = arith.constant 0 : index
      %11 = vector.load %arg4[%c0_6, %c0_7] : memref<32x128xf32, #tpu.memory_space<vmem>>, vector<32x128xf32>
      %cst = arith.constant dense<0.000000e+00> : vector<16x128xf32>
      %12 = tpu.matmul %10, %11, %cst {dimension_numbers = #tpu.dot_dimension_numbers<[1], [0], [0], [1], [0, 0, 1, 1], [], []>} : vector<16x32xf32>, vector<32x128xf32>, vector<16x128xf32> -> vector<16x128xf32>
      %c0_8 = arith.constant 0 : index
      %c0_9 = arith.constant 0 : index
      %13 = vector.load %arg5[%c0_8, %c0_9] : memref<128x32xf32, #tpu.memory_space<vmem>>, vector<128x32xf32>
      %cst_10 = arith.constant dense<0.000000e+00> : vector<16x32xf32>
      %14 = tpu.matmul %12, %13, %cst_10 {dimension_numbers = #tpu.dot_dimension_numbers<[1], [0], [0], [1], [0, 0, 1, 1], [], []>} : vector<16x128xf32>, vector<128x32xf32>, vector<16x32xf32> -> vector<16x32xf32>
      %15 = vector.broadcast %9 : f32 to vector<16x32xf32>
      %16 = arith.mulf %15, %14 : vector<16x32xf32>
      %17 = vector.broadcast %0 : f32 to vector<16x32xf32>
      %18 = arith.addf %16, %17 : vector<16x32xf32>
      %19 = arith.addf %18, %10 : vector<16x32xf32>
      %c0_11 = arith.constant 0 : index
      %c0_12 = arith.constant 0 : index
      %20 = vector.load %arg6[%c0_11, %c0_12] : memref<16x32xf32, #tpu.memory_space<vmem>>, vector<16x32xf32>
      tpu.vector_store %arg6[%c0_11, %c0_12], %19 {strides = array<i32>} : memref<16x32xf32, #tpu.memory_space<vmem>>, vector<16x32xf32>,
    } else {
    }
    %c0_0 = arith.constant 0 : index
    %5 = memref.load %arg1[%c0_0] : memref<1xi32, #tpu.memory_space<smem>>
    %c1_i32_1 = arith.constant 1 : i32
    %6 = arith.cmpi ne, %5, %c1_i32_1 : i32
    %7 = arith.extui %6 : i1 to i32
    %c0_i32_2 = arith.constant 0 : i32
    %8 = arith.cmpi ne, %7, %c0_i32_2 : i32
    scf.if %8 {
      %c0_3 = arith.constant 0 : index
      %c0_4 = arith.constant 0 : index
      %9 = vector.load %arg3[%c0_3, %c0_4] : memref<16x32xf32, #tpu.memory_space<vmem>>, vector<16x32xf32>
      %10 = vector.broadcast %0 : f32 to vector<16x32xf32>
      %11 = arith.addf %9, %10 : vector<16x32xf32>
      %c0_5 = arith.constant 0 : index
      %c0_6 = arith.constant 0 : index
      %12 = vector.load %arg6[%c0_5, %c0_6] : memref<16x32xf32, #tpu.memory_space<vmem>>, vector<16x32xf32>
      tpu.vector_store %arg6[%c0_5, %c0_6], %11 {strides = array<i32>} : memref<16x32xf32, #tpu.memory_space<vmem>>, vector<16x32xf32>,
    } else {
    }
    return
  }
  func.func @transform_0(%arg0: i32, %arg1: memref<1xi32, #tpu.memory_space<smem>>) -> i32 {
    %c0_i32 = arith.constant 0 : i32
    %c0_i32_0 = arith.constant 0 : i32
    return %c0_i32 : i32
  }
  func.func @transform_1(%arg0: i32, %arg1: memref<1xi32, #tpu.memory_space<smem>>) -> (i32, i32) {
    %c0_i32 = arith.constant 0 : i32
    %c0_i32_0 = arith.constant 0 : i32
    return %arg0, %c0_i32 : i32, i32
  }
  func.func @transform_2(%arg0: i32, %arg1: memref<1xi32, #tpu.memory_space<smem>>) -> (i32, i32) {
    %c0_i32 = arith.constant 0 : i32
    %c0_i32_0 = arith.constant 0 : i32
    %c0_i32_1 = arith.constant 0 : i32
    return %c0_i32, %c0_i32_0 : i32, i32
  }
  func.func @transform_3(%arg0: i32, %arg1: memref<1xi32, #tpu.memory_space<smem>>) -> (i32, i32) {
    %c0_i32 = arith.constant 0 : i32
    %c0_i32_0 = arith.constant 0 : i32
    %c0_i32_1 = arith.constant 0 : i32
    return %c0_i32, %c0_i32_0 : i32, i32
  }
  func.func @transform_4(%arg0: i32, %arg1: memref<1xi32, #tpu.memory_space<smem>>) -> (i32, i32) {
    %c0_i32 = arith.constant 0 : i32
    %c0_i32_0 = arith.constant 0 : i32
    return %arg0, %c0_i32 : i32, i32
  }
}

</mosaic_0001>

<bundles_post_ra>
// kernel: nas_adapter_cell.1
= control target key start
LH: loop header
LB: loop body
LE: loop exit
PB: predicated region body
PF: predicated region fallthrough
CT: control target
= control target key end

     0   :  { %s501_s0 = inlined_call_operand.<no memory space> [shape: s32[1], index: 0, kind: input, shape index: {}]   ;;  %s502_s1 = inlined_call_operand.vmem [shape: f32[2], index: 1, kind: input, shape index: {}]   ;;  %s503_s2 = inlined_call_operand.vmem [shape: f32[16,32], index: 2, kind: input, shape index: {}]   ;;  %s504_s3 = inlined_call_operand.vmem [shape: f32[32,128], index: 3, kind: input, shape index: {}]   ;;  %s505_s4 = inlined_call_operand.vmem [shape: f32[128,32], index: 4, kind: input, shape index: {}]   ;;  %s506_s5 = inlined_call_operand.hbm [shape: f32[16,32], index: 5, kind: output, shape index: {}]  }
   0x1   :  { %10 = sst [smem:[#allocation3]] %s501_s0 }
   0x2   :  { %11 = vsyncpa [#allocation6], 0 }
   0x3   :  { %12 = vsyncpa [#allocation5], 0  ;;  %s19_s22 = sshll.u32 %s502_s1, 4  ;;  %s20_s22 = int_to_ptr.vmem [resolvable:$true] %s19_s22 }
   0x4   :  { %s338_s23 = scalar_lea.vmem %s20_s22, 16  ;;  %p343_p1 = scmp.lt.s32.totalorder %s20_s22, %s20_s22 }
   0x5   :  { %p339_p0 = scmp.ne.s32.totalorder %s20_s22, %s338_s23  ;;  %p344_p2 = scmp.lt.s32.totalorder %s338_s23, %s338_s23 }
   0x7   :  { %p345_p3 = por %p344_p2, %p343_p1 }
   0x9   :  { %p346_p4 = pnand %p345_p3, %p339_p0 }
   0xb   :  { %349 = shalt.err (!%p346_p4)
}
   0xc   :  { %s374_s24 = smov [#allocation4]  }
   0xd   :  { %22 = dma.vmem_to_smem %s20_s22, 16, %s374_s24, [#allocation6]  }
   0xe   :  { %370 = dma.done.wait [#allocation6], 16  }
   0xf   :  { %371 = vsyncadd [#allocation6], 4294967280 }
  0x10   :  { %32 = sfence }
  0x11   :  { %s414_s0 = sld [smem:[#allocation4 + $0x1]] }
  0x12   :  { %s34_s25 = sld [smem:[#allocation3]] }
  0x18   :  { %p260_p5 = scmp.ne.s32.totalorder %s34_s25, 1 }
  0x19   :  { %s39_s17 = sld [smem:[#allocation4]] (!%p260_p5) }
  0x1a   :  { %38 = sbr.rel (%p260_p5) target bundleno = 438 (0x1b6), region = 25 }
  0x1f   :  { %v45_v0 = vld [vmem:[%s504_s3 + $0x18] sm:$0xff]  ;;  %v44_v1 = vld [vmem:[%s504_s3 + $0x10] sm:$0xff]  ;;  %vm46_vm0 = vcmask 261120   ;;  %v425_v2 = vld [vmem:[%s503_s2] sm:$0xff]  ;;  %v219_v24 = vstv %s39_s17 }
  0x20   :  { %288 = vmatprep.subr.mxu0 %v45_v0  ;;  %v43_v3 = vld [vmem:[%s504_s3 + $0x8] sm:$0xff]  ;;  %296 = vmatprep.mubr.msk.f32.mxu0 %vm46_vm0, %v425_v2  ;;  %v143_v4 = vld [vmem:[%s505_s4 + $0x78] sm:$0xff]  ;;  %v142_v5 = vld [vmem:[%s505_s4 + $0x70] sm:$0xff]  ;;  %v222_v26 = vstv %s414_s0 }
  0x21   :  { %289 = vmatpush3.msra.mxu0 %v45_v0  ;;  %299 = vmatprep.subr.mxu1 %v143_v4  ;;  %v42_v6 = vld [vmem:[%s504_s3] sm:$0xff]  ;;  %v141_v7 = vld [vmem:[%s505_s4 + $0x68] sm:$0xff]  ;;  %v139_v10 = vld [vmem:[%s505_s4 + $0x58] sm:$0xff] }
  0x22   :  { %290 = vmatprep.subr.mxu0 %v44_v1  ;;  %300 = vmatpush3.msra.mxu1 %v143_v4  ;;  %v41_v8 = vld [vmem:[%s503_s2 + $0x8] sm:$0xff]  ;;  %v140_v9 = vld [vmem:[%s505_s4 + $0x60] sm:$0xff]  ;;  %v138_v11 = vld [vmem:[%s505_s4 + $0x50] sm:$0xff] }
  0x23   :  { %291 = vmatpush3.msra.mxu0 %v44_v1  ;;  %301 = vmatprep.subr.mxu1 %v142_v5  ;;  %v137_v12 = vld [vmem:[%s505_s4 + $0x48] sm:$0xff]  ;;  %v136_v13 = vld [vmem:[%s505_s4 + $0x40] sm:$0xff]  ;;  %v135_v14 = vld [vmem:[%s505_s4 + $0x38] sm:$0xff] }
  0x24   :  { %292 = vmatprep.subr.mxu0 %v43_v3  ;;  %302 = vmatpush3.msra.mxu1 %v142_v5  ;;  %v134_v15 = vld [vmem:[%s505_s4 + $0x30] sm:$0xff]  ;;  %v133_v16 = vld [vmem:[%s505_s4 + $0x28] sm:$0xff]  ;;  %v132_v17 = vld [vmem:[%s505_s4 + $0x20] sm:$0xff] }
  0x25   :  { %293 = vmatpush3.msra.mxu0 %v43_v3  ;;  %303 = vmatprep.subr.mxu1 %v141_v7  ;;  %v131_v18 = vld [vmem:[%s505_s4 + $0x18] sm:$0xff]  ;;  %v130_v19 = vld [vmem:[%s505_s4 + $0x10] sm:$0xff]  ;;  %v129_v20 = vld [vmem:[%s505_s4 + $0x8] sm:$0xff] }
  0x26   :  { %294 = vmatprep.subr.mxu0 %v42_v6  ;;  %304 = vmatpush3.msra.mxu1 %v141_v7  ;;  %v128_v21 = vld [vmem:[%s505_s4] sm:$0xff] }
  0x27   :  { %295 = vmatpush3.msra.mxu0 %v42_v6  ;;  %305 = vmatprep.subr.mxu1 %v140_v9 }
  0x28   :  { %297 = vmatmul.mubr.msk.f32.vlgmr.msra.gmra.mxu0 %vm46_vm0, %v41_v8  ;;  %306 = vmatpush3.msra.mxu1 %v140_v9 }
  0x29   :  { %307 = vmatprep.subr.mxu1 %v139_v10 }
  0x2a   :  { %308 = vmatpush3.msra.mxu1 %v139_v10 }
  0x2b   :  { %309 = vmatprep.subr.mxu1 %v138_v11 }
  0x2c   :  { %310 = vmatpush3.msra.mxu1 %v138_v11 }
  0x2d   :  { %311 = vmatprep.subr.mxu1 %v137_v12 }
  0x2e   :  { %312 = vmatpush3.msra.mxu1 %v137_v12 }
  0x2f   :  { %313 = vmatprep.subr.mxu1 %v136_v13 }
  0x30   :  { %314 = vmatpush3.msra.mxu1 %v136_v13 }
  0x31   :  { %315 = vmatprep.subr.mxu1 %v135_v14 }
  0x32   :  { %316 = vmatpush3.msra.mxu1 %v135_v14 }
  0x33   :  { %317 = vmatprep.subr.mxu1 %v134_v15 }
  0x34   :  { %318 = vmatpush3.msra.mxu1 %v134_v15 }
  0x35   :  { %319 = vmatprep.subr.mxu1 %v133_v16 }
  0x36   :  { %320 = vmatpush3.msra.mxu1 %v133_v16 }
  0x37   :  { %321 = vmatprep.subr.mxu1 %v132_v17 }
  0x38   :  { %322 = vmatpush3.msra.mxu1 %v132_v17 }
  0x39   :  { %323 = vmatprep.subr.mxu1 %v131_v18 }
  0x3a   :  { %324 = vmatpush3.msra.mxu1 %v131_v18 }
  0x3b   :  { %325 = vmatprep.subr.mxu1 %v130_v19 }
  0x3c   :  { %326 = vmatpush3.msra.mxu1 %v130_v19 }
  0x3d   :  { %327 = vmatprep.subr.mxu1 %v129_v20 }
  0x3e   :  { %328 = vmatpush3.msra.mxu1 %v129_v20 }
  0x3f   :  { %329 = vmatprep.subr.mxu1 %v128_v21 }
  0x40   :  { %330 = vmatpush3.msra.mxu1 %v128_v21 }
  0xe8   :  { %v298_v22 = vpop.f32.mrf.mxu0 }
  0xea   :  { %v119_v23 = vpop.f32.mrf.mxu0 }
  0xeb   :  { %331 = vmatprep.mubr.f32.mxu1 %v119_v23 }
  0xec   :  { %332 = vmatmul.mubr.f32.vlgmr.msra.gmra.mxu1 %v298_v22 }
 0x1ac   :  { %v333_v25 = vpop.f32.mrf.mxu1 }
 0x1ad   :  { %v221_v27 = vmul.f32 %v333_v25, %v219_v24 }
 0x1ae   :  { %v210_v28 = vpop.f32.mrf.mxu1 }
 0x1af   :  { %v224_v29 = vadd.f32 %v222_v26, %v221_v27  ;;  %v220_v30 = vmul.f32 %v219_v24, %v210_v28 }
 0x1b1   :  { %v226_v31 = vadd.f32 %v224_v29, %v41_v8  ;;  %v223_v32 = vadd.f32 %v222_v26, %v220_v30 }
 0x1b3   :  { %228 = vst.msk [vmem:[#allocation7 + $0x8] sm:$0xff] %vm46_vm0, %v226_v31  ;;  %v225_v33 = vadd.f32 %v223_v32, %v425_v2 }
 0x1b5   :  { %227 = vst.msk [vmem:[#allocation7] sm:$0xff] %vm46_vm0, %v225_v33 }
 0x1b6 PF:  { %s229_s4 = sld [smem:[#allocation3]] }
 0x1bc   :  { %p263_p6 = scmp.eq.s32.totalorder %s229_s4, 1 }
 0x1be   :  { %233 = sbr.rel (%p263_p6) target bundleno = 455 (0x1c7), region = 29 }
 0x1c3   :  { %v234_v34 = vld [vmem:[%s503_s2] sm:$0xff]  ;;  %v236_v35 = vstv %s414_s0  ;;  %vm239_vm1 = vcmask 261120   ;;  %v235_v36 = vld [vmem:[%s503_s2 + $0x8] sm:$0xff] }
 0x1c4   :  { %v237_v37 = vadd.f32 %v236_v35, %v234_v34  ;;  %v238_v38 = vadd.f32 %v236_v35, %v235_v36 }
 0x1c6   :  { %240 = vst.msk [vmem:[#allocation7] sm:$0xff] %vm239_vm1, %v237_v37  ;;  %241 = vst.msk [vmem:[#allocation7 + $0x8] sm:$0xff] %vm239_vm1, %v238_v38 }
 0x1c7 PF:  { %s375_s21 = smov [#allocation7]  }
 0x1c8   :  { %s247_s22 = sshll.u32 %s375_s21, 4  ;;  %s248_s22 = int_to_ptr.vmem [resolvable:$true] %s247_s22 }
 0x1c9   :  { %s350_s23 = scalar_lea.vmem %s248_s22, 256  ;;  %p355_p8 = scmp.lt.s32.totalorder %s248_s22, %s248_s22 }
 0x1ca   :  { %p351_p7 = scmp.ne.s32.totalorder %s248_s22, %s350_s23  ;;  %p356_p9 = scmp.lt.s32.totalorder %s350_s23, %s350_s23 }
 0x1cc   :  { %p357_p10 = por %p356_p9, %p355_p8 }
 0x1ce   :  { %p358_p11 = pnand %p357_p10, %p351_p7 }
 0x1d0   :  { %361 = shalt.err (!%p358_p11)
}
 0x1d1   :  { %s376_s0 = smov 128   ;;  %s377_s24 = smov 8  }
 0x1d2   :  { %253 = dma.vmem_to_hbm [thread:$0]  %s248_s22, 256, %s506_s5, [#allocation5], %s376_s0, %s376_s0, %s377_s24  }
 0x1d3   :  { %372 = dma.done.wait [#allocation5], 256  }
 0x1d4   :  { %373 = vsyncadd [#allocation5], 4294967040 }
 0x1d5   :  { %257 = vsyncpa [#allocation5], 1 }
 0x1d6   :  { %258 = vsyncpa [#allocation6], 1 }

</bundles_post_ra>
